<compile_context>
chip_gen: v5e
topology: v5e:2x2
jax: 0.10.0
libtpu: 0.0.40
codegen_flags: <defaults>
</compile_context>

<pallas_src>
import jax
import jax.numpy as jnp
from jax import lax
from jax.experimental import pallas as pl
from jax.experimental.pallas import tpu as pltpu

BN_EPS = 1e-5
LANE = 128


def _round_up(n, m=LANE):
    return ((n + m - 1) // m) * m


def _batchnorm_train(h, gamma, beta):
    # BatchNorm1d, training mode: batch mean, biased batch variance (f32 math).
    mean = jnp.mean(h, axis=0, keepdims=True)
    var = jnp.mean((h - mean) * (h - mean), axis=0, keepdims=True)
    return (h - mean) * lax.rsqrt(var + BN_EPS) * gamma + beta


# --------------------------------------------------------------------------- #
# Kernel
# --------------------------------------------------------------------------- #
def vae_forward_kernel(
    x_ref,      # (B, Dp)   bf16
    eps_ref,    # (B, Lp)   f32
    w1_ref,     # (Dp, Hp)  bf16   encoder Linear
    wml_ref,    # (Hp, 2Lp) bf16   fused [mean | logvar] projection
    w3_ref,     # (Lp, Hp)  bf16   decoder Linear
    w4_ref,     # (Hp, Dp)  bf16   decoder output Linear
    vec_ref,    # (8, P)    f32    packed biases / BN gamma,beta
    recon_ref,  # (B, Dp)   f32
    ml_ref,     # (B, 2Lp)  f32    fused [mu | logvar]
):
    Hp = w1_ref.shape[1]
    Dp = w4_ref.shape[1]
    Lp2 = ml_ref.shape[1]
    Lp = Lp2 // 2

    # Packed small vectors (one DMA): rows are
    #   0:b1  1:g1  2:be1  3:[bm|bl]  4:b3  5:g2  6:be2  7:b4
    b1 = vec_ref[0:1, :Hp]
    g1 = vec_ref[1:2, :Hp]
    be1 = vec_ref[2:3, :Hp]
    bml = vec_ref[3:4, :Lp2]
    b3 = vec_ref[4:5, :Hp]
    g2 = vec_ref[5:6, :Hp]
    be2 = vec_ref[6:7, :Hp]
    b4 = vec_ref[7:8, :Dp]

    # ---- encoder: Linear -> ReLU -> BatchNorm1d (bf16 matmul, f32 accumulate) ----
    h = jnp.dot(x_ref[...], w1_ref[...], preferred_element_type=jnp.float32) + b1
    h = jnp.maximum(h, 0.0)
    h = _batchnorm_train(h, g1, be1)

    # ---- latent projections, fused mu|logvar in one matmul ----
    ml = jnp.dot(h.astype(jnp.bfloat16), wml_ref[...],
                 preferred_element_type=jnp.float32) + bml
    mu = ml[:, :Lp]
    logvar = ml[:, Lp:]

    # ---- reparameterize: z = mu + eps * exp(0.5 * logvar) ----
    z = mu + eps_ref[...] * jnp.exp(0.5 * logvar)

    # ---- decoder: Linear -> ReLU -> BatchNorm1d -> Linear -> Sigmoid ----
    d = jnp.dot(z.astype(jnp.bfloat16), w3_ref[...],
                preferred_element_type=jnp.float32) + b3
    d = jnp.maximum(d, 0.0)
    d = _batchnorm_train(d, g2, be2)
    logits = jnp.dot(d.astype(jnp.bfloat16), w4_ref[...],
                     preferred_element_type=jnp.float32) + b4
    # Overflow-safe sigmoid: exp on EUP + approx reciprocal on EUP (VALU stays free).
    recon = pl.reciprocal(1.0 + jnp.exp(-logits), approx=True)

    recon_ref[...] = recon
    ml_ref[...] = ml


# --------------------------------------------------------------------------- #
# Wrapper-side packing / padding
# --------------------------------------------------------------------------- #
def prepare_params(params, input_dim, hidden_dim, latent_dim):
    """Pad feature dims to multiples of 128, fuse mu|logvar weights, cast matmul
    weights to bf16, and pack the 9 small (1, F) vectors into one (8, P) array."""
    Dp = _round_up(input_dim)
    Hp = _round_up(hidden_dim)
    Lp = _round_up(latent_dim)
    P = max(Hp, Dp, 2 * Lp)

    def pad2(a, shape):
        return jnp.zeros(shape, jnp.float32).at[: a.shape[0], : a.shape[1]].set(a)

    w1 = pad2(params["w1"], (Dp, Hp)).astype(jnp.bfloat16)
    wml = jnp.zeros((Hp, 2 * Lp), jnp.float32)
    wml = wml.at[:hidden_dim, :latent_dim].set(params["wm"])
    wml = wml.at[:hidden_dim, Lp:Lp + latent_dim].set(params["wl"])
    wml = wml.astype(jnp.bfloat16)
    w3 = pad2(params["w3"], (Lp, Hp)).astype(jnp.bfloat16)
    w4 = pad2(params["w4"], (Hp, Dp)).astype(jnp.bfloat16)

    vecs = jnp.zeros((8, P), jnp.float32)
    vecs = vecs.at[0, :hidden_dim].set(params["b1"][0])
    vecs = vecs.at[1, :hidden_dim].set(params["g1"][0])
    vecs = vecs.at[2, :hidden_dim].set(params["be1"][0])
    vecs = vecs.at[3, :latent_dim].set(params["bm"][0])
    vecs = vecs.at[3, Lp:Lp + latent_dim].set(params["bl"][0])
    vecs = vecs.at[4, :hidden_dim].set(params["b3"][0])
    vecs = vecs.at[5, :hidden_dim].set(params["g2"][0])
    vecs = vecs.at[6, :hidden_dim].set(params["be2"][0])
    vecs = vecs.at[7, :input_dim].set(params["b4"][0])

    return dict(w1=w1, wml=wml, w3=w3, w4=w4, vecs=vecs, Dp=Dp, Hp=Hp, Lp=Lp)


def _pad_inputs(x, eps, Dp, Lp):
    B, D_in = x.shape
    L = eps.shape[1]
    x_p = jnp.zeros((B, Dp), jnp.bfloat16).at[:, :D_in].set(x.astype(jnp.bfloat16))
    eps_p = jnp.zeros((B, Lp), jnp.float32).at[:, :L].set(eps.astype(jnp.float32))
    return x_p, eps_p


def vae_forward(x, eps, pk):
    """Whole VAE forward in one Pallas invocation (everything fits in VMEM)."""
    B, D_in = x.shape
    L = eps.shape[1]
    Dp, Hp, Lp = pk["Dp"], pk["Hp"], pk["Lp"]
    x_p, eps_p = _pad_inputs(x, eps, Dp, Lp)

    flops = 2 * B * (Dp * Hp + Hp * 2 * Lp + Lp * Hp + Hp * Dp)
    transcendentals = B * (Lp + Dp) + 4 * Hp                      # exp + BN rsqrt (approx)
    bytes_accessed = (
        x_p.size * 2 + eps_p.size * 4
        + (pk["w1"].size + pk["wml"].size + pk["w3"].size + pk["w4"].size) * 2
        + pk["vecs"].size * 4
        + B * Dp * 4 + B * 2 * Lp * 4
    )

    vmem = pl.BlockSpec(memory_space=pltpu.MemorySpace.VMEM)
    recon_p, ml_p = pl.pallas_call(
        vae_forward_kernel,
        out_shape=(
            jax.ShapeDtypeStruct((B, Dp), jnp.float32),       # padded reconstruction
            jax.ShapeDtypeStruct((B, 2 * Lp), jnp.float32),   # padded [mu | logvar]
        ),
        in_specs=[vmem] * 7,
        out_specs=(vmem, vmem),
        cost_estimate=pl.CostEstimate(
            flops=flops,
            transcendentals=transcendentals,
            bytes_accessed=bytes_accessed,
        ),
    )(x_p, eps_p, pk["w1"], pk["wml"], pk["w3"], pk["w4"], pk["vecs"])

    recon = recon_p[:, :D_in]
    mu = ml_p[:, :L]
    logvar = ml_p[:, Lp:Lp + L]
    return recon, mu, logvar


# --------------------------------------------------------------------------- #
# Parameters & references
# --------------------------------------------------------------------------- #
def init_params(key, input_dim, hidden_dim, latent_dim):
    """Deterministic synthetic parameters. Linear weights stored as (in, out)."""
    ks = jax.random.split(key, 8)

    def lin(k, fan_in, fan_out):
        bound = 1.0 / jnp.sqrt(fan_in)
        kw, kb = jax.random.split(k)
        w = jax.random.uniform(kw, (fan_in, fan_out), jnp.float32, -bound, bound)
        b = jax.random.uniform(kb, (1, fan_out), jnp.float32, -bound, bound)
        return w, b

    w1, b1 = lin(ks[0], input_dim, hidden_dim)
    wm, bm = lin(ks[1], hidden_dim, latent_dim)
    wl, bl = lin(ks[2], hidden_dim, latent_dim)
    w3, b3 = lin(ks[3], latent_dim, hidden_dim)
    w4, b4 = lin(ks[4], hidden_dim, input_dim)
    ones = jnp.ones((1, hidden_dim), jnp.float32)
    zeros = jnp.zeros((1, hidden_dim), jnp.float32)
    return dict(
        w1=w1, b1=b1, g1=ones, be1=zeros,
        wm=wm, bm=bm, wl=wl, bl=bl,
        w3=w3, b3=b3, g2=ones, be2=zeros,
        w4=w4, b4=b4,
    )


def vae_forward_ref_bf16(x, eps, pk):
    """Pure-JAX reference with the SAME padded/bf16 weights as the kernel."""
    B, D_in = x.shape
    L = eps.shape[1]
    Dp, Hp, Lp = pk["Dp"], pk["Hp"], pk["Lp"]
    x_p, eps_p = _pad_inputs(x, eps, Dp, Lp)
    v = pk["vecs"]

    def bn(h, g, b):
        m = jnp.mean(h, axis=0, keepdims=True)
        var = jnp.mean((h - m) ** 2, axis=0, keepdims=True)
        return (h - m) * lax.rsqrt(var + BN_EPS) * g + b

    h = jnp.dot(x_p, pk["w1"], preferred_element_type=jnp.float32) + v[0:1, :Hp]
    h = bn(jnp.maximum(h, 0.0), v[1:2, :Hp], v[2:3, :Hp])
    ml = jnp.dot(h.astype(jnp.bfloat16), pk["wml"],
                 preferred_element_type=jnp.float32) + v[3:4, :2 * Lp]
    mu_p, lv_p = ml[:, :Lp], ml[:, Lp:]
    z = mu_p + eps_p * jnp.exp(0.5 * lv_p)
    d = jnp.dot(z.astype(jnp.bfloat16), pk["w3"],
                preferred_element_type=jnp.float32) + v[4:5, :Hp]
    d = bn(jnp.maximum(d, 0.0), v[5:6, :Hp], v[6:7, :Hp])
    logits = jnp.dot(d.astype(jnp.bfloat16), pk["w4"],
                     preferred_element_type=jnp.float32) + v[7:8, :Dp]
    recon = jax.nn.sigmoid(logits)
    return recon[:, :D_in], mu_p[:, :L], lv_p[:, :L]


def vae_forward_ref_f32(x, eps, p):
    """Full-precision, unpadded reference of the original module forward."""
    def bn(h, g, b):
        m = jnp.mean(h, axis=0, keepdims=True)
        v = jnp.mean((h - m) ** 2, axis=0, keepdims=True)
        return (h - m) / jnp.sqrt(v + BN_EPS) * g + b

    h = bn(jax.nn.relu(x @ p["w1"] + p["b1"]), p["g1"], p["be1"])
    mu = h @ p["wm"] + p["bm"]
    logvar = h @ p["wl"] + p["bl"]
    z = mu + eps * jnp.exp(0.5 * logvar)
    d = bn(jax.nn.relu(z @ p["w3"] + p["b3"]), p["g2"], p["be2"])
    return jax.nn.sigmoid(d @ p["w4"] + p["b4"]), mu, logvar


if __name__ == "__main__":
    # Small shapes consistent with the module (input_dim, hidden_dim, latent_dim).
    B, INPUT_DIM, HIDDEN_DIM, LATENT_DIM = 8, 64, 32, 16

    key = jax.random.PRNGKey(0)
    k_x, k_eps, k_p = jax.random.split(key, 3)

    x = jax.random.uniform(k_x, (B, INPUT_DIM), jnp.float32)        # normalized pixels
    eps = jax.random.normal(k_eps, (B, LATENT_DIM), jnp.float32)    # reparam noise
    params = init_params(k_p, INPUT_DIM, HIDDEN_DIM, LATENT_DIM)
    packed = prepare_params(params, INPUT_DIM, HIDDEN_DIM, LATENT_DIM)

    recon, mu, logvar = vae_forward(x, eps, packed)
    jax.block_until_ready((recon, mu, logvar))

    assert recon.shape == (B, INPUT_DIM)
    assert mu.shape == (B, LATENT_DIM) and logvar.shape == (B, LATENT_DIM)

    # Tight check vs. a bf16-matched reference (same padded/cast weights).
    r_b, mu_b, lv_b = vae_forward_ref_bf16(x, eps, packed)
    assert jnp.allclose(recon, r_b, atol=5e-3), "recon mismatch vs bf16 reference"
    assert jnp.allclose(mu, mu_b, atol=2e-3), "mu mismatch vs bf16 reference"
    assert jnp.allclose(logvar, lv_b, atol=2e-3), "logvar mismatch vs bf16 reference"

    # Loose check vs. the full-precision original-module reference
    # (difference is only bf16 matmul rounding).
    r_f, mu_f, lv_f = vae_forward_ref_f32(x, eps, params)
    assert jnp.allclose(recon, r_f, atol=5e-2), "recon mismatch vs f32 reference"
    assert jnp.allclose(mu, mu_f, atol=5e-2), "mu mismatch vs f32 reference"
    assert jnp.allclose(logvar, lv_f, atol=5e-2), "logvar mismatch vs f32 reference"

    print("KERNEL_OK")
</pallas_src>

<mosaic_0001>
module attributes {stable_mosaic.version = 11 : i64} {
  func.func @vae_forward_kernel(%arg0: memref<8x128xbf16, #tpu.memory_space<vmem>>, %arg1: memref<8x128xf32, #tpu.memory_space<vmem>>, %arg2: memref<128x128xbf16, #tpu.memory_space<vmem>>, %arg3: memref<128x256xbf16, #tpu.memory_space<vmem>>, %arg4: memref<128x128xbf16, #tpu.memory_space<vmem>>, %arg5: memref<128x128xbf16, #tpu.memory_space<vmem>>, %arg6: memref<8x256xf32, #tpu.memory_space<vmem>>, %arg7: memref<8x128xf32, #tpu.memory_space<vmem>>, %arg8: memref<8x256xf32, #tpu.memory_space<vmem>>) attributes {dimension_semantics = [], scalar_prefetch = 0 : i64, scratch_operands = 0 : i64, tpu.core_type = #tpu.core_type<tc>} {
    %c0 = arith.constant 0 : index
    %c0_0 = arith.constant 0 : index
    %0 = vector.load %arg6[%c0, %c0_0] : memref<8x256xf32, #tpu.memory_space<vmem>>, vector<1x128xf32>
    %c1 = arith.constant 1 : index
    %c0_1 = arith.constant 0 : index
    %1 = vector.load %arg6[%c1, %c0_1] : memref<8x256xf32, #tpu.memory_space<vmem>>, vector<1x128xf32>
    %c2 = arith.constant 2 : index
    %c0_2 = arith.constant 0 : index
    %2 = vector.load %arg6[%c2, %c0_2] : memref<8x256xf32, #tpu.memory_space<vmem>>, vector<1x128xf32>
    %c3 = arith.constant 3 : index
    %c0_3 = arith.constant 0 : index
    %3 = vector.load %arg6[%c3, %c0_3] : memref<8x256xf32, #tpu.memory_space<vmem>>, vector<1x256xf32>
    %c4 = arith.constant 4 : index
    %c0_4 = arith.constant 0 : index
    %4 = vector.load %arg6[%c4, %c0_4] : memref<8x256xf32, #tpu.memory_space<vmem>>, vector<1x128xf32>
    %c5 = arith.constant 5 : index
    %c0_5 = arith.constant 0 : index
    %5 = vector.load %arg6[%c5, %c0_5] : memref<8x256xf32, #tpu.memory_space<vmem>>, vector<1x128xf32>
    %c6 = arith.constant 6 : index
    %c0_6 = arith.constant 0 : index
    %6 = vector.load %arg6[%c6, %c0_6] : memref<8x256xf32, #tpu.memory_space<vmem>>, vector<1x128xf32>
    %c7 = arith.constant 7 : index
    %c0_7 = arith.constant 0 : index
    %7 = vector.load %arg6[%c7, %c0_7] : memref<8x256xf32, #tpu.memory_space<vmem>>, vector<1x128xf32>
    %c0_8 = arith.constant 0 : index
    %c0_9 = arith.constant 0 : index
    %8 = vector.load %arg0[%c0_8, %c0_9] : memref<8x128xbf16, #tpu.memory_space<vmem>>, vector<8x128xbf16>
    %c0_10 = arith.constant 0 : index
    %c0_11 = arith.constant 0 : index
    %9 = vector.load %arg2[%c0_10, %c0_11] : memref<128x128xbf16, #tpu.memory_space<vmem>>, vector<128x128xbf16>
    %cst = arith.constant dense<0.000000e+00> : vector<8x128xf32>
    %10 = tpu.matmul %8, %9, %cst {dimension_numbers = #tpu.dot_dimension_numbers<[1], [0], [0], [1], [0, 0, 1, 1], [], []>} : vector<8x128xbf16>, vector<128x128xbf16>, vector<8x128xf32> -> vector<8x128xf32>
    %11 = vector.broadcast %0 : vector<1x128xf32> to vector<8x128xf32>
    %12 = arith.addf %10, %11 : vector<8x128xf32>
    %cst_12 = arith.constant 0.000000e+00 : f32
    %13 = vector.broadcast %cst_12 : f32 to vector<8x128xf32>
    %14 = arith.maximumf %12, %13 : vector<8x128xf32>
    %cst_13 = arith.constant dense<0.000000e+00> : vector<128xf32>
    %15 = vector.multi_reduction <add>, %14, %cst_13 [0] : vector<8x128xf32> to vector<128xf32>
    %16 = vector.shape_cast %15 : vector<128xf32> to vector<1x128xf32>
    %cst_14 = arith.constant 8.000000e+00 : f32
    %17 = vector.broadcast %cst_14 : f32 to vector<1x128xf32>
    %18 = arith.divf %16, %17 : vector<1x128xf32>
    %19 = vector.broadcast %18 : vector<1x128xf32> to vector<8x128xf32>
    %20 = arith.subf %14, %19 : vector<8x128xf32>
    %21 = vector.broadcast %18 : vector<1x128xf32> to vector<8x128xf32>
    %22 = arith.subf %14, %21 : vector<8x128xf32>
    %23 = arith.mulf %20, %22 : vector<8x128xf32>
    %cst_15 = arith.constant dense<0.000000e+00> : vector<128xf32>
    %24 = vector.multi_reduction <add>, %23, %cst_15 [0] : vector<8x128xf32> to vector<128xf32>
    %25 = vector.shape_cast %24 : vector<128xf32> to vector<1x128xf32>
    %cst_16 = arith.constant 8.000000e+00 : f32
    %26 = vector.broadcast %cst_16 : f32 to vector<1x128xf32>
    %27 = arith.divf %25, %26 : vector<1x128xf32>
    %28 = vector.broadcast %18 : vector<1x128xf32> to vector<8x128xf32>
    %29 = arith.subf %14, %28 : vector<8x128xf32>
    %cst_17 = arith.constant 9.99999974E-6 : f32
    %30 = vector.broadcast %cst_17 : f32 to vector<1x128xf32>
    %31 = arith.addf %27, %30 : vector<1x128xf32>
    %32 = math.rsqrt %31 : vector<1x128xf32>
    %33 = vector.broadcast %32 : vector<1x128xf32> to vector<8x128xf32>
    %34 = arith.mulf %29, %33 : vector<8x128xf32>
    %35 = vector.broadcast %1 : vector<1x128xf32> to vector<8x128xf32>
    %36 = arith.mulf %34, %35 : vector<8x128xf32>
    %37 = vector.broadcast %2 : vector<1x128xf32> to vector<8x128xf32>
    %38 = arith.addf %36, %37 : vector<8x128xf32>
    %39 = arith.truncf %38 : vector<8x128xf32> to vector<8x128xbf16>
    %c0_18 = arith.constant 0 : index
    %c0_19 = arith.constant 0 : index
    %40 = vector.load %arg3[%c0_18, %c0_19] : memref<128x256xbf16, #tpu.memory_space<vmem>>, vector<128x256xbf16>
    %cst_20 = arith.constant dense<0.000000e+00> : vector<8x256xf32>
    %41 = tpu.matmul %39, %40, %cst_20 {dimension_numbers = #tpu.dot_dimension_numbers<[1], [0], [0], [1], [0, 0, 1, 1], [], []>} : vector<8x128xbf16>, vector<128x256xbf16>, vector<8x256xf32> -> vector<8x256xf32>
    %42 = vector.broadcast %3 : vector<1x256xf32> to vector<8x256xf32>
    %43 = arith.addf %41, %42 : vector<8x256xf32>
    %44 = vector.extract_strided_slice %43 {offsets = [0, 0], sizes = [8, 128], strides = [1, 1]} : vector<8x256xf32> to vector<8x128xf32>
    %45 = vector.extract_strided_slice %43 {offsets = [0, 128], sizes = [8, 128], strides = [1, 1]} : vector<8x256xf32> to vector<8x128xf32>
    %c0_21 = arith.constant 0 : index
    %c0_22 = arith.constant 0 : index
    %46 = vector.load %arg1[%c0_21, %c0_22] : memref<8x128xf32, #tpu.memory_space<vmem>>, vector<8x128xf32>
    %cst_23 = arith.constant 5.000000e-01 : f32
    %47 = vector.broadcast %cst_23 : f32 to vector<8x128xf32>
    %48 = arith.mulf %47, %45 : vector<8x128xf32>
    %49 = math.exp %48 : vector<8x128xf32>
    %50 = arith.mulf %46, %49 : vector<8x128xf32>
    %51 = arith.addf %44, %50 : vector<8x128xf32>
    %52 = arith.truncf %51 : vector<8x128xf32> to vector<8x128xbf16>
    %c0_24 = arith.constant 0 : index
    %c0_25 = arith.constant 0 : index
    %53 = vector.load %arg4[%c0_24, %c0_25] : memref<128x128xbf16, #tpu.memory_space<vmem>>, vector<128x128xbf16>
    %cst_26 = arith.constant dense<0.000000e+00> : vector<8x128xf32>
    %54 = tpu.matmul %52, %53, %cst_26 {dimension_numbers = #tpu.dot_dimension_numbers<[1], [0], [0], [1], [0, 0, 1, 1], [], []>} : vector<8x128xbf16>, vector<128x128xbf16>, vector<8x128xf32> -> vector<8x128xf32>
    %55 = vector.broadcast %4 : vector<1x128xf32> to vector<8x128xf32>
    %56 = arith.addf %54, %55 : vector<8x128xf32>
    %cst_27 = arith.constant 0.000000e+00 : f32
    %57 = vector.broadcast %cst_27 : f32 to vector<8x128xf32>
    %58 = arith.maximumf %56, %57 : vector<8x128xf32>
    %cst_28 = arith.constant dense<0.000000e+00> : vector<128xf32>
    %59 = vector.multi_reduction <add>, %58, %cst_28 [0] : vector<8x128xf32> to vector<128xf32>
    %60 = vector.shape_cast %59 : vector<128xf32> to vector<1x128xf32>
    %cst_29 = arith.constant 8.000000e+00 : f32
    %61 = vector.broadcast %cst_29 : f32 to vector<1x128xf32>
    %62 = arith.divf %60, %61 : vector<1x128xf32>
    %63 = vector.broadcast %62 : vector<1x128xf32> to vector<8x128xf32>
    %64 = arith.subf %58, %63 : vector<8x128xf32>
    %65 = vector.broadcast %62 : vector<1x128xf32> to vector<8x128xf32>
    %66 = arith.subf %58, %65 : vector<8x128xf32>
    %67 = arith.mulf %64, %66 : vector<8x128xf32>
    %cst_30 = arith.constant dense<0.000000e+00> : vector<128xf32>
    %68 = vector.multi_reduction <add>, %67, %cst_30 [0] : vector<8x128xf32> to vector<128xf32>
    %69 = vector.shape_cast %68 : vector<128xf32> to vector<1x128xf32>
    %cst_31 = arith.constant 8.000000e+00 : f32
    %70 = vector.broadcast %cst_31 : f32 to vector<1x128xf32>
    %71 = arith.divf %69, %70 : vector<1x128xf32>
    %72 = vector.broadcast %62 : vector<1x128xf32> to vector<8x128xf32>
    %73 = arith.subf %58, %72 : vector<8x128xf32>
    %cst_32 = arith.constant 9.99999974E-6 : f32
    %74 = vector.broadcast %cst_32 : f32 to vector<1x128xf32>
    %75 = arith.addf %71, %74 : vector<1x128xf32>
    %76 = math.rsqrt %75 : vector<1x128xf32>
    %77 = vector.broadcast %76 : vector<1x128xf32> to vector<8x128xf32>
    %78 = arith.mulf %73, %77 : vector<8x128xf32>
    %79 = vector.broadcast %5 : vector<1x128xf32> to vector<8x128xf32>
    %80 = arith.mulf %78, %79 : vector<8x128xf32>
    %81 = vector.broadcast %6 : vector<1x128xf32> to vector<8x128xf32>
    %82 = arith.addf %80, %81 : vector<8x128xf32>
    %83 = arith.truncf %82 : vector<8x128xf32> to vector<8x128xbf16>
    %c0_33 = arith.constant 0 : index
    %c0_34 = arith.constant 0 : index
    %84 = vector.load %arg5[%c0_33, %c0_34] : memref<128x128xbf16, #tpu.memory_space<vmem>>, vector<128x128xbf16>
    %cst_35 = arith.constant dense<0.000000e+00> : vector<8x128xf32>
    %85 = tpu.matmul %83, %84, %cst_35 {dimension_numbers = #tpu.dot_dimension_numbers<[1], [0], [0], [1], [0, 0, 1, 1], [], []>} : vector<8x128xbf16>, vector<128x128xbf16>, vector<8x128xf32> -> vector<8x128xf32>
    %86 = vector.broadcast %7 : vector<1x128xf32> to vector<8x128xf32>
    %87 = arith.addf %85, %86 : vector<8x128xf32>
    %cst_36 = arith.constant 0.000000e+00 : f32
    %88 = vector.broadcast %cst_36 : f32 to vector<8x128xf32>
    %89 = arith.subf %88, %87 : vector<8x128xf32>
    %90 = math.exp %89 : vector<8x128xf32>
    %cst_37 = arith.constant 1.000000e+00 : f32
    %91 = vector.broadcast %cst_37 : f32 to vector<8x128xf32>
    %92 = arith.addf %91, %90 : vector<8x128xf32>
    %93 = tpu.reciprocal %92 {approx = true} : vector<8x128xf32> -> vector<8x128xf32>
    %c0_38 = arith.constant 0 : index
    %c0_39 = arith.constant 0 : index
    %94 = vector.load %arg7[%c0_38, %c0_39] : memref<8x128xf32, #tpu.memory_space<vmem>>, vector<8x128xf32>
    tpu.vector_store %arg7[%c0_38, %c0_39], %93 {strides = array<i32>} : memref<8x128xf32, #tpu.memory_space<vmem>>, vector<8x128xf32>,
    %c0_40 = arith.constant 0 : index
    %c0_41 = arith.constant 0 : index
    %95 = vector.load %arg8[%c0_40, %c0_41] : memref<8x256xf32, #tpu.memory_space<vmem>>, vector<8x256xf32>
    tpu.vector_store %arg8[%c0_40, %c0_41], %43 {strides = array<i32>} : memref<8x256xf32, #tpu.memory_space<vmem>>, vector<8x256xf32>,
    return
  }
}

</mosaic_0001>

<bundles_post_ra>
// kernel: tpu_custom_call.1
= control target key start
LH: loop header
LB: loop body
LE: loop exit
PB: predicated region body
PF: predicated region fallthrough
CT: control target
= control target key end

     0   :  { %14 = vsyncpa [#allocation3], 0  ;;  %s1169_s0 = inlined_call_operand.hbm [shape: bf16[8,128], index: 0, kind: input, shape index: {}]   ;;  %s1170_s1 = inlined_call_operand.hbm [shape: f32[8,128], index: 1, kind: input, shape index: {}]   ;;  %s1171_s2 = inlined_call_operand.hbm [shape: bf16[128,128], index: 2, kind: input, shape index: {}]   ;;  %s1172_s3 = inlined_call_operand.hbm [shape: bf16[128,256], index: 3, kind: input, shape index: {}]   ;;  %s1173_s4 = inlined_call_operand.hbm [shape: bf16[128,128], index: 4, kind: input, shape index: {}]   ;;  %s1174_s5 = inlined_call_operand.hbm [shape: bf16[128,128], index: 5, kind: input, shape index: {}]   ;;  %s1175_s6 = inlined_call_operand.hbm [shape: f32[8,256], index: 6, kind: input, shape index: {}]   ;;  %s1176_s7 = inlined_call_operand.hbm [shape: f32[8,128], index: 7, kind: output, shape index: {0}]   ;;  %s1177_s8 = inlined_call_operand.hbm [shape: f32[8,256], index: 8, kind: output, shape index: {1}]  }
   0x1   :  { %15 = vsyncpa [#allocation6], 0 }
   0x2   :  { %16 = vsyncpa [#allocation9], 0 }
   0x3   :  { %17 = vsyncpa [#allocation12], 0 }
   0x4   :  { %18 = vsyncpa [#allocation4], 0  ;;  %s36_s29 = sshll.u32 %s1170_s1, 4  ;;  %s37_s29 = int_to_ptr.hbm [resolvable:$true] %s36_s29 }
   0x5   :  { %19 = vsyncpa [#allocation16], 0  ;;  %s1077_s30 = smov [#allocation5]   ;;  %s59_s12 = sshll.u32 %s1172_s3, 4  ;;  %s60_s12 = int_to_ptr.hbm [resolvable:$true] %s59_s12 }
   0x6   :  { %s38_s9 = sshll.u32 %s1077_s30, 4  ;;  %s1078_s13 = smov [#allocation8]   ;;  %s39_s9 = int_to_ptr.vmem [resolvable:$true] %s38_s9 }
   0x7   :  { %41 = dma.hbm_to_vmem [thread:$0]  %s37_s29, 128, %s39_s9, [#allocation6]  }
   0x8   :  { %s61_s14 = sshll.u32 %s1078_s13, 4  ;;  %s1079_s15 = smov 128   ;;  %s62_s14 = int_to_ptr.vmem [resolvable:$true] %s61_s14 }
   0x9   :  { %s1080_s16 = smov 8   ;;  %s85_s1 = sshll.u32 %s1174_s5, 4  ;;  %s86_s1 = int_to_ptr.hbm [resolvable:$true] %s85_s1 }
   0xa   :  { %67 = dma.hbm_to_vmem [thread:$0]  %s60_s12, 2048, %s62_s14, [#allocation9], %s1079_s15, %s1079_s15, %s1080_s16  }
   0xb   :  { %s1081_s19 = smov [#allocation11]   ;;  %s25_s3 = sshll.u32 %s1169_s0, 4  ;;  %s26_s3 = int_to_ptr.hbm [resolvable:$true] %s25_s3 }
   0xc   :  { %s87_s20 = sshll.u32 %s1081_s19, 4  ;;  %s1082_s23 = smov 64   ;;  %s88_s20 = int_to_ptr.vmem [resolvable:$true] %s87_s20 }
   0xd   :  { %s1083_s24 = smov 4   ;;  %s1084_s25 = smov [#allocation2]  }
   0xe   :  { %93 = dma.hbm_to_vmem [thread:$0]  %s86_s1, 1024, %s88_s20, [#allocation12], %s1082_s23, %s1082_s23, %s1083_s24  }
   0xf   :  { %s27_s26 = sshll.u32 %s1084_s25, 4  ;;  %s46_s29 = sshll.u32 %s1171_s2, 4  ;;  %s28_s26 = int_to_ptr.vmem [resolvable:$true] %s27_s26  ;;  %s47_s29 = int_to_ptr.hbm [resolvable:$true] %s46_s29 }
  0x10   :  { %30 = dma.hbm_to_vmem [thread:$0]  %s26_s3, 64, %s28_s26, [#allocation3]  }
  0x11   :  { %s72_s9 = sshll.u32 %s1173_s4, 4  ;;  %s1085_s10 = smov [#allocation7]   ;;  %s73_s9 = int_to_ptr.hbm [resolvable:$true] %s72_s9 }
  0x12   :  { %s48_s11 = sshll.u32 %s1085_s10, 4  ;;  %s1086_s0 = smov [#allocation10]   ;;  %s49_s11 = int_to_ptr.vmem [resolvable:$true] %s48_s11 }
  0x13   :  { %54 = dma.hbm_to_vmem [thread:$0]  %s47_s29, 1024, %s49_s11, [#allocation6], %s1082_s23, %s1082_s23, %s1083_s24  }
  0x14   :  { %s74_s12 = sshll.u32 %s1086_s0, 4  ;;  %s99_s15 = sshll.u32 %s1175_s6, 4  ;;  %s75_s12 = int_to_ptr.vmem [resolvable:$true] %s74_s12  ;;  %s100_s15 = int_to_ptr.hbm [resolvable:$true] %s99_s15 }
  0x15   :  { %80 = dma.hbm_to_vmem [thread:$0]  %s73_s9, 1024, %s75_s12, [#allocation9], %s1082_s23, %s1082_s23, %s1083_s24  }
  0x16   :  { %s1087_s2 = smov [#allocation13]  }
  0x17   :  { %s101_s16 = sshll.u32 %s1087_s2, 4  ;;  %s102_s16 = int_to_ptr.vmem [resolvable:$true] %s101_s16 }
  0x18   :  { %104 = dma.hbm_to_vmem [thread:$0]  %s100_s15, 256, %s102_s16, [#allocation12]  }
  0x19   :  { %1065 = dma.done.wait [#allocation3], 64  }
  0x1a   :  { %1066 = vsyncadd [#allocation3], 4294967232 }
  0x1b   :  { %1067 = dma.done.wait [#allocation6], 1152  }
  0x1c   :  { %1068 = vsyncadd [#allocation6], 4294966144 }
  0x1d   :  { %1069 = dma.done.wait [#allocation9], 3072  }
  0x1e   :  { %1070 = vsyncadd [#allocation9], 4294964224 }
  0x1f   :  { %1071 = dma.done.wait [#allocation12], 1280  }
  0x20   :  { %1072 = vsyncadd [#allocation12], 4294966016  ;;  %v790_v0 = vld [vmem:[#allocation7 + $0x38] sm:$0xff]  ;;  %v789_v1 = vld [vmem:[#allocation7 + $0x30] sm:$0xff]  ;;  %v1088_v9 = vmov 8.0   ;;  %s1089_s4 = smov [#allocation15]  }
  0x21   :  { %207 = vmatpush.bf16.msra.mxu0 %v790_v0  ;;  %v788_v2 = vld [vmem:[#allocation7 + $0x28] sm:$0xff]  ;;  %v787_v3 = vld [vmem:[#allocation7 + $0x20] sm:$0xff]  ;;  %v786_v4 = vld [vmem:[#allocation7 + $0x18] sm:$0xff]  ;;  %837 = vrcp.f32 %v1088_v9  ;;  %s603_s6 = sshll.u32 %s1089_s4, 4  ;;  %s605_s1 = sshll.u32 %s1177_s8, 4  ;;  %s604_s6 = int_to_ptr.vmem [resolvable:$true] %s603_s6  ;;  %s606_s1 = int_to_ptr.hbm [resolvable:$true] %s605_s1 }
  0x22   :  { %v785_v5 = vld [vmem:[#allocation7 + $0x10] sm:$0xff]  ;;  %v784_v6 = vld [vmem:[#allocation7 + $0x8] sm:$0xff]  ;;  %v783_v7 = vld [vmem:[#allocation7] sm:$0xff]  ;;  %s1090_s19 = smov [#allocation14]   ;;  %s594_s3 = sshll.u32 %s1176_s7, 4  ;;  %s595_s3 = int_to_ptr.hbm [resolvable:$true] %s594_s3 }
  0x23   :  { %v142_v8 = vld [vmem:[#allocation2] sm:$0xf]  ;;  %v133_v11 = vld [vmem:[#allocation13] ss:$0 sm:$0xff]  ;;  %v713_v13 = vld [vmem:[#allocation8 + $0x70] sm:$0xf] }
  0x24   :  { %v806_v14 = vld [vmem:[#allocation8 + $0x74] sm:$0xf0]  ;;  %v805_v15 = vld [vmem:[#allocation8 + $0x74] sm:$0xf]  ;;  %v715_v18 = vld [vmem:[#allocation8 + $0x78] sm:$0xf0] }
  0x25   :  { %208 = vmatpush.bf16.msra.mxu0 %v789_v1  ;;  %v714_v17 = vor.u32 %v806_v14, %v713_v13  ;;  %v718_v20 = vor.u32 %v805_v15, %v715_v18  ;;  %v705_v21 = vld [vmem:[#allocation8 + $0x60] sm:$0xf]  ;;  %v804_v22 = vld [vmem:[#allocation8 + $0x64] sm:$0xf0]  ;;  %v803_v23 = vld [vmem:[#allocation8 + $0x64] sm:$0xf] }
  0x26   :  { %v706_v25 = vor.u32 %v804_v22, %v705_v21  ;;  %v707_v26 = vld [vmem:[#allocation8 + $0x68] sm:$0xf0]  ;;  %v697_v29 = vld [vmem:[#allocation8 + $0x50] sm:$0xf]  ;;  %v802_v30 = vld [vmem:[#allocation8 + $0x54] sm:$0xf0] }
  0x27   :  { %v838_v10 = vpop.eup %837  ;;  %360 = vmatpush.bf16.msra.mxu1 %v714_v17  ;;  %373 = vmatpush.bf16.msra.mxu2 %v718_v20  ;;  %v710_v28 = vor.u32 %v803_v23, %v707_v26  ;;  %v801_v31 = vld [vmem:[#allocation8 + $0x54] sm:$0xf]  ;;  %v699_v32 = vld [vmem:[#allocation8 + $0x58] sm:$0xf0]  ;;  %v698_v35 = vor.u32 %v802_v30, %v697_v29  ;;  %v689_v38 = vld [vmem:[#allocation8 + $0x40] sm:$0xf] }
  0x28   :  { %v228_v12 = vmul.f32 8.0, %v838_v10  ;;  %v702_v37 = vor.u32 %v801_v31, %v699_v32  ;;  %v800_v39 = vld [vmem:[#allocation8 + $0x44] sm:$0xf0]  ;;  %v799_v41 = vld [vmem:[#allocation8 + $0x44] sm:$0xf]  ;;  %vm232_vm0 = vweird.f32 %v838_v10  ;;  %v814_v20 = vld [vmem:[#allocation10 + $0x38] sm:$0xff] }
  0x29   :  { %209 = vmatpush.bf16.msra.mxu0 %v788_v2  ;;  %v691_v42 = vld [vmem:[#allocation8 + $0x48] sm:$0xf0]  ;;  %v690_v45 = vor.u32 %v800_v39, %v689_v38  ;;  %v681_v48 = vld [vmem:[#allocation8 + $0x30] sm:$0xf]  ;;  %v798_v49 = vld [vmem:[#allocation8 + $0x34] sm:$0xf0]  ;;  %457 = vmatpush.bf16.msra.mxu3 %v814_v20 }
  0x2a   :  { %v229_v24 = vsub.f32 1.0, %v228_v12  ;;  %v694_v47 = vor.u32 %v799_v41, %v691_v42  ;;  %v797_v50 = vld [vmem:[#allocation8 + $0x34] sm:$0xf]  ;;  %v683_v51 = vld [vmem:[#allocation8 + $0x38] sm:$0xf0]  ;;  %v682_v54 = vor.u32 %v798_v49, %v681_v48  ;;  %v811_v38 = vld [vmem:[#allocation10 + $0x20] sm:$0xff] }
  0x2b   :  { %361 = vmatpush.bf16.msra.mxu1 %v706_v25  ;;  %374 = vmatpush.bf16.msra.mxu2 %v710_v28  ;;  %v686_v56 = vor.u32 %v797_v50, %v683_v51  ;;  %v673_v57 = vld [vmem:[#allocation8 + $0x20] sm:$0xf]  ;;  %v796_v58 = vld [vmem:[#allocation8 + $0x24] sm:$0xf0]  ;;  %v795_v59 = vld [vmem:[#allocation8 + $0x24] sm:$0xf] }
  0x2c   :  { %v230_v34 = vmul.f32 %v838_v10, %v229_v24  ;;  %v675_v60 = vld [vmem:[#allocation8 + $0x28] sm:$0xf0]  ;;  %v674_v62 = vor.u32 %v796_v58, %v673_v57  ;;  %v665_v1 = vld [vmem:[#allocation8 + $0x10] sm:$0xf]  ;;  %v794_v2 = vld [vmem:[#allocation8 + $0x14] sm:$0xf0] }
  0x2d   :  { %210 = vmatpush.bf16.msra.mxu0 %v787_v3  ;;  %v678_v0 = vor.u32 %v795_v59, %v675_v60  ;;  %v793_v3 = vld [vmem:[#allocation8 + $0x14] sm:$0xf]  ;;  %v657_v9 = vld [vmem:[#allocation8] sm:$0xf]  ;;  %v659_v12 = vld [vmem:[#allocation8 + $0x8] sm:$0xf0] }
  0x2e   :  { %v231_v44 = vadd.f32 %v838_v10, %v230_v34  ;;  %v813_v22 = vld [vmem:[#allocation10 + $0x30] sm:$0xff]  ;;  %v134_v30 = vld [vmem:[#allocation13 + $0x1] ss:$0 sm:$0xff]  ;;  %v810_v39 = vld [vmem:[#allocation10 + $0x18] sm:$0xff]  ;;  %s592_s20 = sshll.u32 %s1090_s19, 4  ;;  %s593_s20 = int_to_ptr.vmem [resolvable:$true] %s592_s20 }
  0x2f   :  { %362 = vmatpush.bf16.msra.mxu1 %v698_v35  ;;  %375 = vmatpush.bf16.msra.mxu2 %v702_v37  ;;  %v812_v37 = vld [vmem:[#allocation10 + $0x28] sm:$0xff]  ;;  %v807_v42 = vld [vmem:[#allocation10] sm:$0xff] }
  0x30   :  { %v1157_v53 = vsel %vm232_vm0, %v838_v10, %v231_v44  ;;  %v792_v10 = vld [vmem:[#allocation8 + $0x4] sm:$0xf0]  ;;  %458 = vmatpush.bf16.msra.mxu3 %v813_v22  ;;  %v138_v60 = vld [vmem:[#allocation13 + $0x4] ss:$0 sm:$0xff] }
  0x31   :  { %211 = vmatpush.bf16.msra.mxu0 %v786_v4  ;;  %v667_v4 = vld [vmem:[#allocation8 + $0x18] sm:$0xf0]  ;;  %v658_v14 = vor.u32 %v792_v10, %v657_v9  ;;  %v808_v41 = vld [vmem:[#allocation10 + $0x8] sm:$0xff] }
  0x33   :  { %363 = vmatpush.bf16.msra.mxu1 %v690_v45  ;;  %376 = vmatpush.bf16.msra.mxu2 %v694_v47 }
  0x34   :  { %459 = vmatpush.bf16.msra.mxu3 %v812_v37 }
  0x35   :  { %212 = vmatpush.bf16.msra.mxu0 %v785_v5 }
  0x37   :  { %364 = vmatpush.bf16.msra.mxu1 %v682_v54  ;;  %377 = vmatpush.bf16.msra.mxu2 %v686_v56 }
  0x38   :  { %460 = vmatpush.bf16.msra.mxu3 %v811_v38 }
  0x39   :  { %213 = vmatpush.bf16.msra.mxu0 %v784_v6  ;;  %v666_v6 = vor.u32 %v794_v2, %v665_v1  ;;  %v821_v1 = vld [vmem:[#allocation11 + $0x30] sm:$0xff] }
  0x3b   :  { %365 = vmatpush.bf16.msra.mxu1 %v674_v62  ;;  %378 = vmatpush.bf16.msra.mxu2 %v678_v0  ;;  %v822_v62 = vld [vmem:[#allocation11 + $0x38] sm:$0xff] }
  0x3c   :  { %461 = vmatpush.bf16.msra.mxu3 %v810_v39 }
  0x3d   :  { %214 = vmatpush.bf16.msra.mxu0 %v783_v7 }
  0x3f   :  { %366 = vmatpush.bf16.msra.mxu1 %v666_v6 }
  0x40   :  { %215 = vmatmul.bf16.vlgmr.msra.gmra.mxu0 %v142_v8  ;;  %v670_v8 = vor.u32 %v793_v3, %v667_v4 }
  0x41   :  { %566 = vmatpush.bf16.msrb.mxu0 %v822_v62 }
  0x42   :  { %379 = vmatpush.bf16.msra.mxu2 %v670_v8  ;;  %v819_v8 = vld [vmem:[#allocation11 + $0x20] sm:$0xff] }
  0x43   :  { %367 = vmatpush.bf16.msra.mxu1 %v658_v14  ;;  %v817_v14 = vld [vmem:[#allocation11 + $0x10] sm:$0xff] }
  0x45   :  { %567 = vmatpush.bf16.msrb.mxu0 %v821_v1 }
  0xbd   :  { %v216_v16 = vpop.f32.mrf.mxu0 }
  0xbe   :  { %v217_v19 = vadd.f32 %v216_v16, %v133_v11  ;;  %v791_v11 = vld [vmem:[#allocation8 + $0x4] sm:$0xf] }
  0xbf   :  { %v662_v16 = vor.u32 %v791_v11, %v659_v12  ;;  %v818_v11 = vld [vmem:[#allocation11 + $0x18] sm:$0xff] }
  0xc0   :  { %v220_v27 = vmax.f32 %v217_v19, 0.0 }
  0xc1   :  { %380 = vmatpush.bf16.msra.mxu2 %v662_v16 }
  0xc2   :  { %v221_v33 = vrot.slane %v220_v27, 4 }
  0xc4   :  { %v222_v36 = vadd.f32 %v221_v33, %v220_v27  ;;  %v135_v33 = vld [vmem:[#allocation13 + $0x2] ss:$0 sm:$0xff] }
  0xc5   :  { %v218_v40 = vpop.f32.mrf.mxu0 }
  0xc6   :  { %v223_v43 = vrot.slane %v222_v36, 2  ;;  %v809_v40 = vld [vmem:[#allocation10 + $0x10] sm:$0xff] }
  0xc7   :  { %462 = vmatpush.bf16.msra.mxu3 %v809_v40 }
  0xc8   :  { %v224_v46 = vadd.f32 %v223_v43, %v222_v36  ;;  %v137_v43 = vld [vmem:[#allocation13 + $0x3] ss:$8 sm:$0x3] }
  0xc9   :  { %v276_v44 = vperm.slane %v137_v43, 0  ;;  %v277_v47 = vperm.slane %v137_v43, 1 }
  0xca   :  { %v225_v52 = vrot.slane %v224_v46, 1 }
  0xcb   :  { %463 = vmatpush.bf16.msra.mxu3 %v808_v41 }
  0xcc   :  { %v226_v55 = vadd.f32 %v225_v52, %v224_v46 }
  0xce   :  { %v234_v61 = vmul.f32 %v1157_v53, %v226_v55  ;;  %v386_v55 = vld [vmem:[#allocation5] sm:$0xff] }
  0xcf   :  { %464 = vmatpush.bf16.msra.mxu3 %v807_v42 }
  0xd0   :  { %v235_v63 = vsub.f32 %v220_v27, %v234_v61 }
  0xd2   :  { %v236_v5 = vmul.f32 %v235_v63, %v235_v63 }
  0xd4   :  { %v237_v7 = vrot.slane %v236_v5, 4 }
  0xd6   :  { %v238_v13 = vadd.f32 %v237_v7, %v236_v5  ;;  %v820_v5 = vld [vmem:[#allocation11 + $0x28] sm:$0xff] }
  0xd7   :  { %568 = vmatpush.bf16.msrb.mxu0 %v820_v5 }
  0xd8   :  { %v239_v15 = vrot.slane %v238_v13, 2 }
  0xda   :  { %v240_v17 = vadd.f32 %v239_v15, %v238_v13 }
  0xdb   :  { %569 = vmatpush.bf16.msrb.mxu0 %v819_v8 }
  0xdc   :  { %v241_v18 = vrot.slane %v240_v17, 1 }
  0xde   :  { %v242_v19 = vadd.f32 %v241_v18, %v240_v17  ;;  %v816_v17 = vld [vmem:[#allocation11 + $0x8] sm:$0xff] }
  0xdf   :  { %570 = vmatpush.bf16.msrb.mxu0 %v818_v11 }
  0xe0   :  { %v243_v21 = vmul.f32 %v242_v19, %v1157_v53  ;;  %v815_v19 = vld [vmem:[#allocation11] sm:$0xff] }
  0xe2   :  { %v244_v23 = vadd.f32 1e-05, %v243_v21 }
  0xe3   :  { %571 = vmatpush.bf16.msrb.mxu0 %v817_v14 }
  0xe4   :  { %839 = vrsqrt.f32 %v244_v23  ;;  %vm251_vm2 = vweird.f32 %v244_v23 }
  0xe7   :  { %572 = vmatpush.bf16.msrb.mxu0 %v816_v17 }
  0xea   :  { %v840_v24 = vpop.eup %839 }
  0xeb   :  { %v246_v25 = vmul.f32 %v840_v24, %v244_v23  ;;  %vm252_vm1 = vweird.f32 %v840_v24  ;;  %573 = vmatpush.bf16.msrb.mxu0 %v815_v19 }
  0xec   :  { %vm253_vm3 = vmor %vm251_vm2, %vm252_vm1 }
  0xed   :  { %v247_v26 = vmul.f32 %v840_v24, %v246_v25 }
  0xef   :  { %v248_v27 = vmul.f32 0.5, %v247_v26 }
  0xf1   :  { %v249_v28 = vsub.f32 1.5, %v248_v27 }
  0xf3   :  { %v250_v29 = vmul.f32 %v840_v24, %v249_v28 }
  0xf5   :  { %v254_v31 = vsel %vm253_vm3, %v840_v24, %v250_v29 }
  0xf6   :  { %v255_v32 = vmul.f32 %v254_v31, %v235_v63 }
  0xf8   :  { %v256_v34 = vmul.f32 %v255_v32, %v134_v30 }
  0xfa   :  { %v257_v35 = vadd.f32 %v256_v34, %v135_v33  ;;  %v139_v33 = vld [vmem:[#allocation13 + $0x5] ss:$0 sm:$0xff] }
  0xfc   :  { %v258_v36 = vpack.c.bf16 %v257_v35, %v257_v35  ;;  %v140_v35 = vld [vmem:[#allocation13 + $0x6] ss:$0 sm:$0xff] }
  0xfe   :  { %368 = vmatmul.bf16.vlgmr.msra.gmra.mxu1 %v258_v36  ;;  %381 = vmatmul.bf16.vlgmr.msra.gmra.mxu2 %v258_v36 }
 0x17b   :  { %v369_v45 = vpop.f32.mrf.mxu1 }
 0x17c   :  { %v370_v46 = vadd.f32 %v369_v45, %v276_v44 }
 0x17e   :  { %585 = vst [vmem:[#allocation15] sm:$0xff] %v370_v46 }
 0x181   :  { %v382_v48 = vpop.f32.mrf.mxu2 }
 0x182   :  { %v383_v49 = vadd.f32 %v382_v48, %v277_v47 }
 0x183   :  { %v371_v50 = vpop.f32.mrf.mxu1 }
 0x184   :  { %v387_v51 = vmul.f32 0.5, %v383_v49  ;;  %586 = vst [vmem:[#allocation15 + $0x8] sm:$0xff] %v383_v49 }
 0x185   :  { %608 = dma.vmem_to_hbm [thread:$0]  %s604_s6, 256, %s606_s1, [#allocation16]  }
 0x186   :  { %v388_v52 = vmul.f32 1.442695, %v387_v51 }
 0x188   :  { %841 = vpow2.f32 %v388_v52 }
 0x189   :  { %v384_v54 = vpop.f32.mrf.mxu2 }
 0x18e   :  { %v842_v56 = vpop.eup %841 }
 0x18f   :  { %v390_v57 = vmul.f32 %v842_v56, %v386_v55 }
 0x191   :  { %v391_v58 = vadd.f32 %v390_v57, %v370_v46 }
 0x193   :  { %v392_v59 = vpack.c.bf16 %v391_v58, %v391_v58 }
 0x195   :  { %465 = vmatmul.bf16.vlgmr.msra.gmra.mxu3 %v392_v59 }
 0x218   :  { %v466_v61 = vpop.f32.mrf.mxu3 }
 0x219   :  { %v467_v63 = vadd.f32 %v466_v61, %v138_v60 }
 0x21b   :  { %v470_v0 = vmax.f32 %v467_v63, 0.0 }
 0x21d   :  { %v471_v2 = vrot.slane %v470_v0, 4 }
 0x21f   :  { %v472_v3 = vadd.f32 %v471_v2, %v470_v0 }
 0x220   :  { %v468_v4 = vpop.f32.mrf.mxu3 }
 0x221   :  { %v473_v6 = vrot.slane %v472_v3, 2 }
 0x223   :  { %v474_v7 = vadd.f32 %v473_v6, %v472_v3 }
 0x225   :  { %v475_v9 = vrot.slane %v474_v7, 1 }
 0x227   :  { %v476_v10 = vadd.f32 %v475_v9, %v474_v7 }
 0x229   :  { %v477_v12 = vmul.f32 %v476_v10, %v1157_v53 }
 0x22b   :  { %v478_v13 = vsub.f32 %v470_v0, %v477_v12 }
 0x22d   :  { %v479_v15 = vmul.f32 %v478_v13, %v478_v13 }
 0x22f   :  { %v480_v16 = vrot.slane %v479_v15, 4 }
 0x231   :  { %v481_v18 = vadd.f32 %v480_v16, %v479_v15 }
 0x233   :  { %v482_v20 = vrot.slane %v481_v18, 2 }
 0x235   :  { %v483_v21 = vadd.f32 %v482_v20, %v481_v18 }
 0x237   :  { %v484_v22 = vrot.slane %v483_v21, 1 }
 0x239   :  { %v485_v23 = vadd.f32 %v484_v22, %v483_v21 }
 0x23b   :  { %v486_v24 = vmul.f32 %v485_v23, %v1157_v53  ;;  %v141_v53 = vld [vmem:[#allocation13 + $0x7] ss:$0 sm:$0xff] }
 0x23d   :  { %v487_v25 = vadd.f32 1e-05, %v486_v24 }
 0x23f   :  { %843 = vrsqrt.f32 %v487_v25  ;;  %vm494_vm5 = vweird.f32 %v487_v25 }
 0x245   :  { %v844_v26 = vpop.eup %843 }
 0x246   :  { %v489_v27 = vmul.f32 %v844_v26, %v487_v25  ;;  %vm495_vm4 = vweird.f32 %v844_v26 }
 0x247   :  { %vm496_vm6 = vmor %vm494_vm5, %vm495_vm4 }
 0x248   :  { %v490_v28 = vmul.f32 %v844_v26, %v489_v27 }
 0x24a   :  { %v491_v29 = vmul.f32 0.5, %v490_v28 }
 0x24c   :  { %v492_v30 = vsub.f32 1.5, %v491_v29 }
 0x24e   :  { %v493_v31 = vmul.f32 %v844_v26, %v492_v30 }
 0x250   :  { %v497_v32 = vsel %vm496_vm6, %v844_v26, %v493_v31 }
 0x251   :  { %v498_v34 = vmul.f32 %v497_v32, %v478_v13 }
 0x253   :  { %v499_v36 = vmul.f32 %v498_v34, %v139_v33 }
 0x255   :  { %v500_v37 = vadd.f32 %v499_v36, %v140_v35 }
 0x257   :  { %v501_v38 = vpack.c.bf16 %v500_v37, %v500_v37 }
 0x259   :  { %574 = vmatmul.bf16.vlgmr.msrb.gmra.mxu0 %v501_v38 }
 0x2d6   :  { %v575_v39 = vpop.f32.mrf.mxu0 }
 0x2d7   :  { %v576_v40 = vadd.f32 %v575_v39, %v141_v53 }
 0x2d9   :  { %v579_v41 = vsub.f32 0.0, %v576_v40 }
 0x2db   :  { %v580_v42 = vmul.f32 1.442695, %v579_v41 }
 0x2dd   :  { %845 = vpow2.f32 %v580_v42 }
 0x2de   :  { %v577_v43 = vpop.f32.mrf.mxu0 }
 0x2e3   :  { %v846_v44 = vpop.eup %845 }
 0x2e4   :  { %v582_v45 = vadd.f32 1.0, %v846_v44 }
 0x2e6   :  { %847 = vrcp.f32 %v582_v45 }
 0x2ec   :  { %v848_v46 = vpop.eup %847 }
 0x2ed   :  { %584 = vst [vmem:[#allocation14] sm:$0xff] %v848_v46 }
 0x2ee   :  { %597 = dma.vmem_to_hbm [thread:$0]  %s593_s20, 128, %s595_s3, [#allocation4]  }
 0x2ef   :  { %1073 = dma.done.wait [#allocation4], 128  }
 0x2f0   :  { %1074 = vsyncadd [#allocation4], 4294967168 }
 0x2f1   :  { %1075 = dma.done.wait [#allocation16], 256  }
 0x2f2   :  { %1076 = vsyncadd [#allocation16], 4294967040 }
 0x2f3   :  { %617 = vsyncpa [#allocation3], 1 }
 0x2f4   :  { %618 = vsyncpa [#allocation6], 1 }
 0x2f5   :  { %619 = vsyncpa [#allocation9], 1 }
 0x2f6   :  { %620 = vsyncpa [#allocation12], 1 }
 0x2f7   :  { %621 = vsyncpa [#allocation4], 1 }
 0x2f8   :  { %622 = vsyncpa [#allocation16], 1 }

</bundles_post_ra>
